<compile_context>
chip_gen: v5e
topology: v5e:2x2
jax: 0.10.0
libtpu: 0.0.40
codegen_flags: <defaults>
</compile_context>

<pallas_src>
import functools

import jax
import jax.numpy as jnp
from jax.experimental import pallas as pl
from jax.experimental.pallas import tpu as pltpu


LANE = 128  # TPU lane width (used only for hidden-layer padding).


def _round_up(x, m):
    return ((x + m - 1) // m) * m


def _vmem_capacity_bytes():
    """Generation-aware VMEM capacity (v7x: 64 MiB/TC; v5e/v6e: 128 MiB)."""
    try:
        return int(pltpu.get_tpu_info().vmem_capacity_bytes)
    except Exception:
        return 64 << 20  # conservative v7x floor


# ----------------------------------------------------------------------------
# Pallas kernel: fused multi-layer MLP (Linear -> ReLU -> ... -> Linear)
# ----------------------------------------------------------------------------
def _mlp_kernel(num_layers, x_ref, *refs):
    """refs = (w0, b0, w1, b1, ..., o_ref)."""
    o_ref = refs[-1]
    h = x_ref[...]                                      # bf16 (row_tile, c_in)
    for layer in range(num_layers):
        w_ref = refs[2 * layer]                         # bf16 (K, N)
        b_ref = refs[2 * layer + 1]                     # f32  (1, N)
        acc = jnp.dot(h, w_ref[...], preferred_element_type=jnp.float32)
        acc = acc + b_ref[...]                          # f32 bias add
        if layer < num_layers - 1:
            # ReLU in f32 (v5e has no bf16 VALU), then bf16 for the next MXU pass.
            h = jnp.maximum(acc, 0.0).astype(jnp.bfloat16)
        else:
            h = acc                                     # f32 logits (row_tile, c_out)
    o_ref[...] = h.astype(o_ref.dtype)


def mlp_pallas(x, params, *, row_tile=2048):
    """Apply the fused MLP kernel.

    x:       (N, c_in) bfloat16 -- NOT lane-padded.
    params:  list of (w bf16 (K, N), b f32 (1, N)); hidden dims padded to 128,
             first K and last N left at their true sizes.
    Returns: (N, c_out) float32 logits (exact shape, no wrapper slice).
    """
    n, c_in = x.shape
    num_layers = len(params)
    c_out = params[-1][0].shape[1]

    # Row tile: multiple of 16 (bf16 sublane pack); clamp for tiny inputs; force
    # >= 2 grid steps so the "parallel" axis uses both v7x TensorCores.
    row_tile = max(16, min(_round_up(row_tile, 16), _round_up(n, 16)))
    if n > 16:
        row_tile = min(row_tile, max(16, _round_up(pl.cdiv(n, 2), 16)))
    grid = (pl.cdiv(n, row_tile),)  # ragged last tile handled by masked write

    in_specs = [pl.BlockSpec((row_tile, c_in), lambda i: (i, 0))]
    flat_params = []
    for (w, b) in params:
        # Full-array, grid-invariant blocks -> resident every grid step.
        in_specs.append(pl.BlockSpec(w.shape, lambda i: (0, 0)))
        in_specs.append(pl.BlockSpec(b.shape, lambda i: (0, 0)))
        flat_params += [w, b]

    # Lane dim == full array dim (c_out) is legal; HBM write is only c_out lanes.
    out_spec = pl.BlockSpec((row_tile, c_out), lambda i: (i, 0))

    # Advisory cost estimate so XLA schedules this against surrounding glue ops.
    flops = 2 * n * sum(int(w.shape[0]) * int(w.shape[1]) for w, _ in params)
    param_bytes = sum(int(w.size) * 2 + int(b.size) * 4 for w, b in params)
    bytes_accessed = n * c_in * 2 + n * c_out * 4 + param_bytes
    cost = pl.CostEstimate(flops=int(flops), transcendentals=0,
                           bytes_accessed=int(bytes_accessed))

    # VMEM budget: double-buffered activation tiles + params (counted twice to be
    # safe under default buffering) + slack, capped below physical VMEM.
    tile_bytes = 2 * row_tile * (c_in * 2 + c_out * 4)
    need = int(1.5 * (tile_bytes + 2 * param_bytes)) + (8 << 20)
    vmem_cap = max(32 << 20, _vmem_capacity_bytes() - (16 << 20))
    vmem_limit = min(need, vmem_cap)

    return pl.pallas_call(
        functools.partial(_mlp_kernel, num_layers),
        out_shape=jax.ShapeDtypeStruct((n, c_out), jnp.float32),
        grid_spec=pltpu.PrefetchScalarGridSpec(
            num_scalar_prefetch=0,
            grid=grid,
            in_specs=in_specs,
            out_specs=out_spec,
        ),
        compiler_params=pltpu.CompilerParams(
            dimension_semantics=("parallel",),   # rows shard across v7x's 2 TCs
            vmem_limit_bytes=vmem_limit,
        ),
        cost_estimate=cost,
    )(x, *flat_params)


# ----------------------------------------------------------------------------
# AssignerMLPWithZ forward (glue in JAX, MLP in Pallas)
# ----------------------------------------------------------------------------
class AssignerMLPWithZPallas:
    def __init__(self, channels, dropout_p, assign_edge=False, *, key):
        del dropout_p  # identity in eval mode
        channels = list(channels)
        in_dim = channels[0]
        self.assign_edge = assign_edge
        channels[0] = (in_dim * 3 + in_dim) if assign_edge else (in_dim + in_dim)
        self.channels = channels
        self.c_in = channels[0]
        self.c_out = channels[-1]

        # PyTorch-Linear-style init: U(-1/sqrt(fan_in), 1/sqrt(fan_in)).
        # Weights stored pre-transposed (K, N), bf16; biases f32.  Hidden dims are
        # zero-padded to 128 lanes; the first K (= c_in) and last N (= c_out) are
        # left unpadded so the HBM input/output streams carry no padding.
        params = []
        prev = self.c_in
        n_layers = len(channels) - 1
        for idx, (cin, cout) in enumerate(zip(channels[:-1], channels[1:])):
            key, k_w, k_b = jax.random.split(key, 3)
            bound = 1.0 / float(cin) ** 0.5
            w = jax.random.uniform(k_w, (cin, cout), jnp.float32, -bound, bound)
            b = jax.random.uniform(k_b, (1, cout), jnp.float32, -bound, bound)
            is_last = idx == n_layers - 1
            n_pad = cout if is_last else _round_up(cout, LANE)
            w_pad = jnp.zeros((prev, n_pad), jnp.float32).at[:cin, :cout].set(w)
            b_pad = jnp.zeros((1, n_pad), jnp.float32).at[:, :cout].set(b)
            params.append((w_pad.astype(jnp.bfloat16), b_pad))
            prev = n_pad
        self.params = params

    def _entity_and_z(self, emb, edge_index, batch, Z):
        if self.assign_edge:
            col, row = edge_index[0], edge_index[1]
            f1, f2 = emb[col], emb[row]
            merged = jnp.stack([f1, f2], axis=0)
            mean = merged.mean(axis=0)
            mx = merged.max(axis=0)
            mn = merged.min(axis=0)
            entity_feature = jnp.concatenate([mean, mx, mn], axis=-1)
            z_ext = Z[batch[row]]
        else:
            entity_feature = emb
            z_ext = Z[batch]
        return entity_feature, z_ext

    def _mlp_input(self, emb, edge_index, batch, Z):
        # No lane padding: (N, c_in) bf16 goes straight into the kernel.
        entity_feature, z_ext = self._entity_and_z(emb, edge_index, batch, Z)
        return jnp.concatenate([entity_feature, z_ext], axis=-1).astype(jnp.bfloat16)

    def __call__(self, emb, edge_index, batch, Z, *, row_tile=2048):
        x = self._mlp_input(emb, edge_index, batch, Z)
        return mlp_pallas(x, self.params, row_tile=row_tile)  # (N, c_out) f32

    # Pure-JAX reference of the exact same (bf16-input, f32-accumulate) math.
    def reference(self, emb, edge_index, batch, Z):
        h = self._mlp_input(emb, edge_index, batch, Z)
        for i, (w, b) in enumerate(self.params):
            h = jnp.dot(h, w, preferred_element_type=jnp.float32) + b
            if i < len(self.params) - 1:
                h = jnp.maximum(h, 0.0).astype(jnp.bfloat16)
        return h  # (N, c_out) f32


# ----------------------------------------------------------------------------
if __name__ == "__main__":
    key = jax.random.PRNGKey(0)
    k_emb, k_batch, k_z, k_edge, k_mod1, k_mod2 = jax.random.split(key, 6)

    num_nodes = 60      # not a multiple of the row tile -> exercises ragged tail
    num_edges = 90
    num_graphs = 4
    in_dim = 16
    channels = [in_dim, 32, 8]          # [in, hidden, n_assign_logits]
    dropout_p = 0.1

    emb = jax.random.normal(k_emb, (num_nodes, in_dim), jnp.float32)
    batch = jax.random.randint(k_batch, (num_nodes,), 0, num_graphs, jnp.int32)
    Z = jax.random.normal(k_z, (num_graphs, in_dim), jnp.float32)
    edge_index = jax.random.randint(k_edge, (2, num_edges), 0, num_nodes, jnp.int32)

    # --- node-assignment variant (assign_edge=False): c_in = 32, grid = 2 ---
    model_node = AssignerMLPWithZPallas(list(channels), dropout_p,
                                        assign_edge=False, key=k_mod1)
    out_node = jax.block_until_ready(model_node(emb, edge_index, batch, Z))
    ref_node = model_node.reference(emb, edge_index, batch, Z)
    assert out_node.shape == (num_nodes, channels[-1])
    assert jnp.allclose(out_node, ref_node, atol=5e-3, rtol=5e-3)

    # --- edge-assignment variant (assign_edge=True): c_in = 64, ragged tail ---
    model_edge = AssignerMLPWithZPallas(list(channels), dropout_p,
                                        assign_edge=True, key=k_mod2)
    out_edge = jax.block_until_ready(model_edge(emb, edge_index, batch, Z))
    ref_edge = model_edge.reference(emb, edge_index, batch, Z)
    assert out_edge.shape == (num_edges, channels[-1])
    assert jnp.allclose(out_edge, ref_edge, atol=5e-3, rtol=5e-3)

    # --- small-tile check: grid of several steps with a masked last tile ---
    out_tiled = jax.block_until_ready(
        model_edge(emb, edge_index, batch, Z, row_tile=16))
    assert jnp.allclose(out_tiled, ref_edge, atol=5e-3, rtol=5e-3)

    print("KERNEL_OK")
</pallas_src>

<mosaic_0001>
module attributes {stable_mosaic.version = 11 : i64} {
  func.func @_mlp_kernel(%arg0: i32, %arg1: memref<32x32xbf16, #tpu.memory_space<vmem>>, %arg2: memref<32x128xbf16, #tpu.memory_space<vmem>>, %arg3: memref<1x128xf32, #tpu.memory_space<vmem>>, %arg4: memref<128x8xbf16, #tpu.memory_space<vmem>>, %arg5: memref<1x8xf32, #tpu.memory_space<vmem>>, %arg6: memref<32x8xf32, #tpu.memory_space<vmem>>) attributes {dimension_semantics = [#tpu.dimension_semantics<parallel>], iteration_bounds = array<i64: 2>, scalar_prefetch = 0 : i64, scratch_operands = 0 : i64, tpu.core_type = #tpu.core_type<tc>, window_params = [{transform_indices = @transform_0, window_bounds = array<i64: 32, 32>}, {pipeline_mode = #tpu.pipeline_mode<synchronous>, transform_indices = @transform_1, window_bounds = array<i64: 32, 128>}, {pipeline_mode = #tpu.pipeline_mode<synchronous>, transform_indices = @transform_2, window_bounds = array<i64: 1, 128>}, {pipeline_mode = #tpu.pipeline_mode<synchronous>, transform_indices = @transform_3, window_bounds = array<i64: 128, 8>}, {pipeline_mode = #tpu.pipeline_mode<synchronous>, transform_indices = @transform_4, window_bounds = array<i64: 1, 8>}, {transform_indices = @transform_5, window_bounds = array<i64: 32, 8>}]} {
    %c0 = arith.constant 0 : index
    %c0_0 = arith.constant 0 : index
    %0 = vector.load %arg1[%c0, %c0_0] : memref<32x32xbf16, #tpu.memory_space<vmem>>, vector<32x32xbf16>
    %c0_1 = arith.constant 0 : index
    %c0_2 = arith.constant 0 : index
    %1 = vector.load %arg2[%c0_1, %c0_2] : memref<32x128xbf16, #tpu.memory_space<vmem>>, vector<32x128xbf16>
    %cst = arith.constant dense<0.000000e+00> : vector<32x128xf32>
    %2 = tpu.matmul %0, %1, %cst {dimension_numbers = #tpu.dot_dimension_numbers<[1], [0], [0], [1], [0, 0, 1, 1], [], []>} : vector<32x32xbf16>, vector<32x128xbf16>, vector<32x128xf32> -> vector<32x128xf32>
    %c0_3 = arith.constant 0 : index
    %c0_4 = arith.constant 0 : index
    %3 = vector.load %arg3[%c0_3, %c0_4] : memref<1x128xf32, #tpu.memory_space<vmem>>, vector<1x128xf32>
    %4 = vector.broadcast %3 : vector<1x128xf32> to vector<32x128xf32>
    %5 = arith.addf %2, %4 : vector<32x128xf32>
    %cst_5 = arith.constant 0.000000e+00 : f32
    %6 = vector.broadcast %cst_5 : f32 to vector<32x128xf32>
    %7 = arith.maximumf %5, %6 : vector<32x128xf32>
    %8 = arith.truncf %7 : vector<32x128xf32> to vector<32x128xbf16>
    %c0_6 = arith.constant 0 : index
    %c0_7 = arith.constant 0 : index
    %9 = vector.load %arg4[%c0_6, %c0_7] : memref<128x8xbf16, #tpu.memory_space<vmem>>, vector<128x8xbf16>
    %cst_8 = arith.constant dense<0.000000e+00> : vector<32x8xf32>
    %10 = tpu.matmul %8, %9, %cst_8 {dimension_numbers = #tpu.dot_dimension_numbers<[1], [0], [0], [1], [0, 0, 1, 1], [], []>} : vector<32x128xbf16>, vector<128x8xbf16>, vector<32x8xf32> -> vector<32x8xf32>
    %c0_9 = arith.constant 0 : index
    %c0_10 = arith.constant 0 : index
    %11 = vector.load %arg5[%c0_9, %c0_10] : memref<1x8xf32, #tpu.memory_space<vmem>>, vector<1x8xf32>
    %12 = vector.broadcast %11 : vector<1x8xf32> to vector<32x8xf32>
    %13 = arith.addf %10, %12 : vector<32x8xf32>
    %c0_11 = arith.constant 0 : index
    %c0_12 = arith.constant 0 : index
    %14 = vector.load %arg6[%c0_11, %c0_12] : memref<32x8xf32, #tpu.memory_space<vmem>>, vector<32x8xf32>
    tpu.vector_store %arg6[%c0_11, %c0_12], %13 {strides = array<i32>} : memref<32x8xf32, #tpu.memory_space<vmem>>, vector<32x8xf32>,
    return
  }
  func.func @transform_0(%arg0: i32) -> (i32, i32) {
    %c0_i32 = arith.constant 0 : i32
    %c0_i32_0 = arith.constant 0 : i32
    return %arg0, %c0_i32 : i32, i32
  }
  func.func @transform_1(%arg0: i32) -> (i32, i32) {
    %c0_i32 = arith.constant 0 : i32
    %c0_i32_0 = arith.constant 0 : i32
    %c0_i32_1 = arith.constant 0 : i32
    return %c0_i32, %c0_i32_0 : i32, i32
  }
  func.func @transform_2(%arg0: i32) -> (i32, i32) {
    %c0_i32 = arith.constant 0 : i32
    %c0_i32_0 = arith.constant 0 : i32
    %c0_i32_1 = arith.constant 0 : i32
    return %c0_i32, %c0_i32_0 : i32, i32
  }
  func.func @transform_3(%arg0: i32) -> (i32, i32) {
    %c0_i32 = arith.constant 0 : i32
    %c0_i32_0 = arith.constant 0 : i32
    %c0_i32_1 = arith.constant 0 : i32
    return %c0_i32, %c0_i32_0 : i32, i32
  }
  func.func @transform_4(%arg0: i32) -> (i32, i32) {
    %c0_i32 = arith.constant 0 : i32
    %c0_i32_0 = arith.constant 0 : i32
    %c0_i32_1 = arith.constant 0 : i32
    return %c0_i32, %c0_i32_0 : i32, i32
  }
  func.func @transform_5(%arg0: i32) -> (i32, i32) {
    %c0_i32 = arith.constant 0 : i32
    %c0_i32_0 = arith.constant 0 : i32
    return %arg0, %c0_i32 : i32, i32
  }
}

</mosaic_0001>

<bundles_post_ra>
// kernel: tpu_custom_call.1
= control target key start
LH: loop header
LB: loop body
LE: loop exit
PB: predicated region body
PF: predicated region fallthrough
CT: control target
= control target key end

     0   :  { %s572_s18 = smov 0   ;;  %s629_s0 = inlined_call_operand.vmem [shape: bf16[60,32], index: 0, kind: input, shape index: {}]   ;;  %s630_s1 = inlined_call_operand.vmem [shape: bf16[32,128], index: 1, kind: input, shape index: {}]   ;;  %s631_s2 = inlined_call_operand.vmem [shape: f32[1,128], index: 2, kind: input, shape index: {}]   ;;  %s632_s3 = inlined_call_operand.vmem [shape: bf16[128,8], index: 3, kind: input, shape index: {}]   ;;  %s633_s4 = inlined_call_operand.vmem [shape: f32[1,8], index: 4, kind: input, shape index: {}]   ;;  %s634_s5 = inlined_call_operand.vmem [shape: f32[60,8], index: 5, kind: output, shape index: {}]  }
   0x1 LB: > { %s443_s19 = sadd.s32 4294967295, %s540_s18   ;;  %p447_p0 = scmp.ge.s32.totalorder %s540_s18, 1  ;;  %s540_s18 = sphi %s572_s18, %s15_s18  }
   0x2   : > { %p188_p1 = scmp.lt.s32.totalorder %s540_s18, 3 }
   0x4   : > { %p189_p2 = pnand %p447_p0, %p188_p1 }
   0x5   : > { %s448_s22 = sshll.u32 (!%p189_p2), %s443_s19, 2 }
   0x6   : > { %192 = sbr.rel (%p189_p2) target bundleno = 318 (0x13e), region = 40  ;;  %p217_p3 = scmp.lt.s32.totalorder (!%p189_p2), %s448_s22, 7 }
   0xb   : > { %v507_v0 = vld [vmem:[%s630_s1 + $0x8] sm:$0xff]  ;;  %v515_v1 = vld [vmem:[%s632_s3 + $0x38] sm:$0xff]  ;;  %v506_v2 = vld [vmem:[%s630_s1] sm:$0xff]  ;;  %s636_s22 = smov (!%p217_p3, %s448_s22), 7  ;;  %vm263_vm0 = vcmask 261120   ;;  %vm382_vm1 = vcmask 64512  }
   0xc   : > { %276 = vmatpush.bf16.msra.mxu0 %v507_v0  ;;  %363 = vmatpush.bf16.msra.mxu1 %v515_v1  ;;  %v514_v3 = vld [vmem:[%s632_s3 + $0x30] sm:$0xff]  ;;  %s449_s29 = sshll.u32 %s636_s22, 2  ;;  %v513_v4 = vld [vmem:[%s632_s3 + $0x28] sm:$0xff]  ;;  %v512_v6 = vld [vmem:[%s632_s3 + $0x20] sm:$0xff]  ;;  %s451_s24 = sshll.u32 %s636_s22, 3 }
   0xd   : > { %516 = vmatpush.bf16.msra.mxu2 %v515_v1  ;;  %s220_s7 = scalar_lea.vmem %s629_s0, %s449_s29  ;;  %v511_v8 = vld [vmem:[%s632_s3 + $0x18] sm:$0xff]  ;;  %v510_v9 = vld [vmem:[%s632_s3 + $0x10] sm:$0xff]  ;;  %v509_v10 = vld [vmem:[%s632_s3 + $0x8] sm:$0xff]  ;;  %s226_s29 = scalar_lea.vmem %s634_s5, %s451_s24 }
   0xe   : > { %v504_v5 = vld [vmem:[%s220_s7] sm:$0xff]  ;;  %v505_v7 = vld [vmem:[%s220_s7 + $0x8] sm:$0xff] }
   0xf   : > { %v508_v11 = vld [vmem:[%s632_s3] sm:$0xff] }
  0x10   : > { %277 = vmatpush.bf16.msra.mxu0 %v506_v2  ;;  %364 = vmatpush.bf16.msra.mxu1 %v514_v3  ;;  %v532_v13 = vld [vmem:[%s631_s2] ss:$0 sm:$0xff] }
  0x11   : > { %517 = vmatpush.bf16.msra.mxu2 %v514_v3  ;;  %v533_v27 = vld [vmem:[%s633_s4] ss:$0 sm:$0xff] }
  0x13   : > { %468 = vmatmul.msk.bf16.vlgmr.msra.gmra.mxu0 %vm263_vm0, %v504_v5 }
  0x14   : > { %365 = vmatpush.bf16.msra.mxu1 %v513_v4 }
  0x15   : > { %518 = vmatpush.bf16.msra.mxu2 %v513_v4 }
  0x18   : > { %366 = vmatpush.bf16.msra.mxu1 %v512_v6 }
  0x19   : > { %519 = vmatpush.bf16.msra.mxu2 %v512_v6 }
  0x1c   : > { %367 = vmatpush.bf16.msra.mxu1 %v511_v8 }
  0x1d   : > { %520 = vmatpush.bf16.msra.mxu2 %v511_v8 }
  0x20   : > { %368 = vmatpush.bf16.msra.mxu1 %v510_v9 }
  0x21   : > { %521 = vmatpush.bf16.msra.mxu2 %v510_v9 }
  0x23   : > { %469 = vmatmul.msk.bf16.gmra.mxu0 %vm263_vm0, %v505_v7 }
  0x24   : > { %369 = vmatpush.bf16.msra.mxu1 %v509_v10 }
  0x25   : > { %522 = vmatpush.bf16.msra.mxu2 %v509_v10 }
  0x28   : > { %370 = vmatpush.bf16.msra.mxu1 %v508_v11 }
  0x29   : > { %523 = vmatpush.bf16.msra.mxu2 %v508_v11 }
  0x90   : > { %v279_v12 = vpop.f32.mrf.mxu0 }
  0x91   : > { %v280_v14 = vadd.f32 %v532_v13, %v279_v12 }
  0x93   : > { %v289_v17 = vmax.f32 %v280_v14, 0.0 }
  0x98   : > { %v281_v15 = vpop.f32.mrf.mxu0 }
  0x99   : > { %v282_v16 = vadd.f32 %v532_v13, %v281_v15 }
  0x9b   : > { %v290_v18 = vmax.f32 %v282_v16, 0.0 }
  0x9d   : > { %v293_v19 = vpack.c.bf16 %v290_v18, %v289_v17 }
  0x9f   : > { %371 = vmatmul.bf16.vlgmr.msra.gmra.mxu1 %v293_v19 }
  0xa0   : > { %v284_v20 = vpop.f32.mrf.mxu0 }
  0xa1   : > { %v285_v21 = vadd.f32 %v532_v13, %v284_v20 }
  0xa3   : > { %v291_v24 = vmax.f32 %v285_v21, 0.0 }
  0xa8   : > { %v286_v22 = vpop.f32.mrf.mxu0 }
  0xa9   : > { %v287_v23 = vadd.f32 %v532_v13, %v286_v22 }
  0xab   : > { %v292_v25 = vmax.f32 %v287_v23, 0.0 }
  0xad   : > { %v294_v26 = vpack.c.bf16 %v292_v25, %v291_v24 }
  0xaf   : > { %376 = vmatmul.bf16.vlgmr.msra.gmra.mxu2 %v294_v26 }
 0x11c   : > { %v372_v28 = vpop.f32.mrf.mxu1 }
 0x11d   : > { %v373_v29 = vadd.f32 %v533_v27, %v372_v28 }
 0x11f   : > { %383 = vst.msk [vmem:[%s226_s29] sm:$0xff] %vm382_vm1, %v373_v29 }
 0x124   : > { %v374_v30 = vpop.f32.mrf.mxu1 }
 0x125   : > { %v375_v31 = vadd.f32 %v533_v27, %v374_v30 }
 0x127   : > { %384 = vst.msk [vmem:[%s226_s29 + $0x8] sm:$0xff] %vm382_vm1, %v375_v31 }
 0x132   : > { %v377_v32 = vpop.f32.mrf.mxu2 }
 0x133   : > { %v378_v33 = vadd.f32 %v533_v27, %v377_v32 }
 0x135   : > { %385 = vst.msk [vmem:[%s226_s29 + $0x10] sm:$0xff] %vm382_vm1, %v378_v33 }
 0x13a   : > { %v379_v34 = vpop.f32.mrf.mxu2 }
 0x13b   : > { %v380_v35 = vadd.f32 %v533_v27, %v379_v34 }
 0x13d   : > { %386 = vst.msk [vmem:[%s226_s29 + $0x18] sm:$0xff] %vm382_vm1, %v380_v35 }
 0x13e PF: > { %s15_s18 = sadd.s32 1, %s540_s18  }
 0x13f   : > { %p12_p4 = scmp.ge.s32.totalorder %s15_s18, 4  }
 0x141   :  { %14 = sbr.rel (!%p12_p4) target bundleno = 1 (0x1), region = 70 }

</bundles_post_ra>
